<compile_context>
chip_gen: v7x
topology: tpu7x:2x2x1
jax: 0.10.0
libtpu: 0.0.40
codegen_flags: <defaults>
</compile_context>

<pallas_src>
import jax
import jax.numpy as jnp
from jax.experimental import pallas as pl
from jax.experimental.pallas import tpu as pltpu


def dino_head_kernel(x_ref, wb_ref, bb_ref, wp_ref, bp_ref, o_ref, acc_ref):
    k = pl.program_id(1)

    @pl.when(k == 0)
    def _init():
        # Fold the backbone bias into the accumulator init (saves a full-tile add).
        acc_ref[...] = jnp.broadcast_to(
            bb_ref[...].astype(jnp.float32), acc_ref.shape)

    # Backbone partial matmul: (tm, tk) @ (tk, E), f32 accumulation on the MXU.
    acc_ref[...] += jnp.dot(
        x_ref[...], wb_ref[...], preferred_element_type=jnp.float32)

    @pl.when(k == pl.num_programs(1) - 1)
    def _finalize():
        feats = acc_ref[...]
        # torch.nn.functional.normalize(x, dim=-1, p=2): x / max(||x||, eps)
        # == x * rsqrt(max(||x||^2, eps^2)) for eps = 1e-12 (representable in f32).
        eps = 1e-12
        sq_norm = jnp.sum(feats * feats, axis=-1, keepdims=True)
        inv_norm = jax.lax.rsqrt(jnp.maximum(sq_norm, eps * eps))
        normed = (feats * inv_norm).astype(wp_ref.dtype)

        # Projection: (tm, E) @ (E, O_pad) + b_p, f32 accumulation; lane-dense store.
        out = jnp.dot(normed, wp_ref[...], preferred_element_type=jnp.float32)
        out = out + bp_ref[...].astype(jnp.float32)
        o_ref[...] = out.astype(o_ref.dtype)


def _round_up(x, m):
    return (x + m - 1) // m * m


def _pick_tk(D, tm, E, budget_bytes=8 << 20):
    """Largest K tile that divides D and keeps double-buffered bf16 tiles in budget."""
    if D <= 2048:
        return D
    for cand in (4096, 2048, 1024, 512, 256, 128):
        if D % cand == 0 and 2 * 2 * (tm * cand + cand * E) <= budget_bytes:
            return cand
    return D  # fall back: take D whole (no clean 128-multiple divisor)


def dino_head_forward(x_nchw, w_backbone, b_backbone, w_proj, b_proj):
    B = x_nchw.shape[0]
    D, E = w_backbone.shape
    O = w_proj.shape[1]

    # --- Glue: flatten NCHW -> (B, D); bf16 streams, f32 biases. ---------------
    x_flat = x_nchw.reshape(B, D).astype(jnp.bfloat16)
    w_b = w_backbone.astype(jnp.bfloat16)
    w_p = w_proj.astype(jnp.bfloat16)
    b_b = b_backbone.reshape(1, E).astype(jnp.float32)
    b_p = b_proj.reshape(1, O).astype(jnp.float32)

    # Sublane-align the batch (pad rows are zero and sliced off afterwards).
    B_pad = _round_up(B, 8)
    if B_pad != B:
        x_flat = jnp.pad(x_flat, ((0, B_pad - B), (0, 0)))

    # Lane-dense output: pad O to a multiple of 128 (unmasked vst), slice after.
    O_pad = _round_up(O, 128)
    if O_pad != O:
        w_p = jnp.pad(w_p, ((0, 0), (0, O_pad - O)))
        b_p = jnp.pad(b_p, ((0, 0), (0, O_pad - O)))

    # Batch tile: partial last tiles are safe (rows are independent).  K tile must
    # evenly divide D (partial K would pollute the accumulation).
    tm = B_pad if B_pad <= 256 else 256
    tk = _pick_tk(D, tm, E)

    grid = (pl.cdiv(B_pad, tm), D // tk)

    # VMEM budget: double-buffered bf16 input tiles + resident weights/biases +
    # f32 output tile + f32 accumulator, with 2x headroom, clamped to 32 MiB
    # (safe on v5e/v6e 128 MiB and v7x 64 MiB physical VMEM).
    per_step = (tm * tk * 2 + tk * E * 2 + E * 4 + E * O_pad * 2
                + O_pad * 4 + tm * O_pad * 4)
    vmem_limit = int(min(max(2 * 2 * per_step + tm * E * 4, 4 << 20), 32 << 20))

    cost = pl.CostEstimate(
        flops=2 * B * D * E + 2 * B * E * O,
        transcendentals=B,
        bytes_accessed=(x_flat.size * 2 + w_b.size * 2 + w_p.size * 2
                        + (E + O_pad) * 4 + B_pad * O_pad * 4),
    )

    out_padded = pl.pallas_call(
        dino_head_kernel,
        out_shape=jax.ShapeDtypeStruct((B_pad, O_pad), jnp.float32),
        grid_spec=pltpu.PrefetchScalarGridSpec(
            num_scalar_prefetch=0,
            grid=grid,
            in_specs=[
                pl.BlockSpec((tm, tk), lambda i, k: (i, k)),     # x stream
                pl.BlockSpec((tk, E), lambda i, k: (k, 0)),      # W_b K-slabs
                pl.BlockSpec((1, E), lambda i, k: (0, 0)),       # b_b (resident)
                pl.BlockSpec((E, O_pad), lambda i, k: (0, 0)),   # W_p (resident)
                pl.BlockSpec((1, O_pad), lambda i, k: (0, 0)),   # b_p (resident)
            ],
            out_specs=pl.BlockSpec((tm, O_pad), lambda i, k: (i, 0)),
            scratch_shapes=[pltpu.VMEM((tm, E), jnp.float32)],
        ),
        compiler_params=pltpu.CompilerParams(
            dimension_semantics=("parallel", "arbitrary"),
            vmem_limit_bytes=vmem_limit,
        ),
        cost_estimate=cost,
    )(x_flat, w_b, b_b, w_p, b_p)

    # TODO(synk): for very large projection heads (E*O_pad not VMEM-resident),
    # tile W_p along O as an extra grid axis; resident is fine at these sizes.
    return out_padded[:B, :O]


def reference_forward(x_nchw, w_backbone, b_backbone, w_proj, b_proj):
    # Pure-JAX (f32) reference matching the PyTorch semantics.
    B = x_nchw.shape[0]
    x_flat = x_nchw.reshape(B, -1)
    feats = x_flat @ w_backbone + b_backbone
    norm = jnp.maximum(jnp.linalg.norm(feats, axis=-1, keepdims=True), 1e-12)
    feats = feats / norm
    return feats @ w_proj + b_proj


if __name__ == "__main__":
    # Small shapes consistent with the module: batch=2, channels=4, spatial=16,
    # embeddings_dim=32, output_dim=16.  D=1024 exercises the backbone matmul.
    B, C, H, W = 2, 4, 16, 16
    D = C * H * W          # 1024 flattened backbone input
    E = 32                 # embeddings_dim
    O = 16                 # output_dim

    key = jax.random.PRNGKey(0)
    kx, kwb, kbb, kwp, kbp = jax.random.split(key, 5)

    x = jax.random.normal(kx, (B, C, H, W), dtype=jnp.float32)
    # Deterministic synthetic parameters (no checkpoint loading).
    w_backbone = jax.random.normal(kwb, (D, E), dtype=jnp.float32) * (1.0 / D**0.5)
    b_backbone = jax.random.normal(kbb, (E,), dtype=jnp.float32) * 0.01
    w_proj = jax.random.normal(kwp, (E, O), dtype=jnp.float32) * (1.0 / E**0.5)
    b_proj = jax.random.normal(kbp, (O,), dtype=jnp.float32) * 0.01

    out = dino_head_forward(x, w_backbone, b_backbone, w_proj, b_proj)
    out = jax.block_until_ready(out)

    ref = reference_forward(x, w_backbone, b_backbone, w_proj, b_proj)
    assert out.shape == (B, O), out.shape
    # bf16 activation/weight streams (f32 accumulation) vs. pure-f32 reference:
    # expected relative error is well below 1%.
    assert jnp.allclose(out, ref, atol=2e-2, rtol=2e-2), "mismatch vs reference"

    print("KERNEL_OK")
</pallas_src>

<mosaic_0001>
module attributes {stable_mosaic.version = 11 : i64} {
  func.func @dino_head_kernel(%arg0: i32, %arg1: i32, %arg2: memref<8x1024xbf16, #tpu.memory_space<vmem>>, %arg3: memref<1024x32xbf16, #tpu.memory_space<vmem>>, %arg4: memref<1x32xf32, #tpu.memory_space<vmem>>, %arg5: memref<32x128xbf16, #tpu.memory_space<vmem>>, %arg6: memref<1x128xf32, #tpu.memory_space<vmem>>, %arg7: memref<8x128xf32, #tpu.memory_space<vmem>>, %arg8: memref<8x32xf32, #tpu.memory_space<vmem>>) attributes {dimension_semantics = [#tpu.dimension_semantics<parallel>, #tpu.dimension_semantics<arbitrary>], iteration_bounds = array<i64: 1, 1>, scalar_prefetch = 0 : i64, scratch_operands = 1 : i64, tpu.core_type = #tpu.core_type<tc>, window_params = [{transform_indices = @transform_0, window_bounds = array<i64: 8, 1024>}, {transform_indices = @transform_1, window_bounds = array<i64: 1024, 32>}, {pipeline_mode = #tpu.pipeline_mode<synchronous>, transform_indices = @transform_2, window_bounds = array<i64: 1, 32>}, {pipeline_mode = #tpu.pipeline_mode<synchronous>, transform_indices = @transform_3, window_bounds = array<i64: 32, 128>}, {pipeline_mode = #tpu.pipeline_mode<synchronous>, transform_indices = @transform_4, window_bounds = array<i64: 1, 128>}, {transform_indices = @transform_5, window_bounds = array<i64: 8, 128>}]} {
    %c0_i32 = arith.constant 0 : i32
    %0 = arith.cmpi eq, %arg1, %c0_i32 : i32
    %1 = arith.extui %0 : i1 to i32
    %c0_i32_0 = arith.constant 0 : i32
    %2 = arith.cmpi ne, %1, %c0_i32_0 : i32
    scf.if %2 {
      %c0_10 = arith.constant 0 : index
      %c0_11 = arith.constant 0 : index
      %12 = vector.load %arg4[%c0_10, %c0_11] : memref<1x32xf32, #tpu.memory_space<vmem>>, vector<1x32xf32>
      %13 = vector.shape_cast %12 : vector<1x32xf32> to vector<1x32xf32>
      %14 = vector.broadcast %13 : vector<1x32xf32> to vector<8x32xf32>
      %c0_12 = arith.constant 0 : index
      %c0_13 = arith.constant 0 : index
      %15 = vector.load %arg8[%c0_12, %c0_13] : memref<8x32xf32, #tpu.memory_space<vmem>>, vector<8x32xf32>
      tpu.vector_store %arg8[%c0_12, %c0_13], %14 {strides = array<i32>} : memref<8x32xf32, #tpu.memory_space<vmem>>, vector<8x32xf32>,
    } else {
    }
    %c0 = arith.constant 0 : index
    %c0_1 = arith.constant 0 : index
    %3 = vector.load %arg8[%c0, %c0_1] : memref<8x32xf32, #tpu.memory_space<vmem>>, vector<8x32xf32>
    %c0_2 = arith.constant 0 : index
    %c0_3 = arith.constant 0 : index
    %4 = vector.load %arg2[%c0_2, %c0_3] : memref<8x1024xbf16, #tpu.memory_space<vmem>>, vector<8x1024xbf16>
    %c0_4 = arith.constant 0 : index
    %c0_5 = arith.constant 0 : index
    %5 = vector.load %arg3[%c0_4, %c0_5] : memref<1024x32xbf16, #tpu.memory_space<vmem>>, vector<1024x32xbf16>
    %cst = arith.constant dense<0.000000e+00> : vector<8x32xf32>
    %6 = tpu.matmul %4, %5, %cst {dimension_numbers = #tpu.dot_dimension_numbers<[1], [0], [0], [1], [0, 0, 1, 1], [], []>} : vector<8x1024xbf16>, vector<1024x32xbf16>, vector<8x32xf32> -> vector<8x32xf32>
    %7 = arith.addf %3, %6 : vector<8x32xf32>
    %c0_6 = arith.constant 0 : index
    %c0_7 = arith.constant 0 : index
    %8 = vector.load %arg8[%c0_6, %c0_7] : memref<8x32xf32, #tpu.memory_space<vmem>>, vector<8x32xf32>
    tpu.vector_store %arg8[%c0_6, %c0_7], %7 {strides = array<i32>} : memref<8x32xf32, #tpu.memory_space<vmem>>, vector<8x32xf32>,
    %c0_i32_8 = arith.constant 0 : i32
    %9 = arith.cmpi eq, %arg1, %c0_i32_8 : i32
    %10 = arith.extui %9 : i1 to i32
    %c0_i32_9 = arith.constant 0 : i32
    %11 = arith.cmpi ne, %10, %c0_i32_9 : i32
    scf.if %11 {
      %c0_10 = arith.constant 0 : index
      %c0_11 = arith.constant 0 : index
      %12 = vector.load %arg8[%c0_10, %c0_11] : memref<8x32xf32, #tpu.memory_space<vmem>>, vector<8x32xf32>
      %13 = arith.mulf %12, %12 : vector<8x32xf32>
      %cst_12 = arith.constant dense<0.000000e+00> : vector<8xf32>
      %14 = vector.multi_reduction <add>, %13, %cst_12 [1] : vector<8x32xf32> to vector<8xf32>
      %15 = vector.shape_cast %14 : vector<8xf32> to vector<8x1xf32>
      %cst_13 = arith.constant 1.000000e-24 : f32
      %16 = vector.broadcast %cst_13 : f32 to vector<8x1xf32>
      %17 = arith.maximumf %15, %16 : vector<8x1xf32>
      %18 = math.rsqrt %17 : vector<8x1xf32>
      %19 = vector.broadcast %18 : vector<8x1xf32> to vector<8x32xf32>
      %20 = arith.mulf %12, %19 : vector<8x32xf32>
      %21 = arith.truncf %20 : vector<8x32xf32> to vector<8x32xbf16>
      %c0_14 = arith.constant 0 : index
      %c0_15 = arith.constant 0 : index
      %22 = vector.load %arg5[%c0_14, %c0_15] : memref<32x128xbf16, #tpu.memory_space<vmem>>, vector<32x128xbf16>
      %cst_16 = arith.constant dense<0.000000e+00> : vector<8x128xf32>
      %23 = tpu.matmul %21, %22, %cst_16 {dimension_numbers = #tpu.dot_dimension_numbers<[1], [0], [0], [1], [0, 0, 1, 1], [], []>} : vector<8x32xbf16>, vector<32x128xbf16>, vector<8x128xf32> -> vector<8x128xf32>
      %c0_17 = arith.constant 0 : index
      %c0_18 = arith.constant 0 : index
      %24 = vector.load %arg6[%c0_17, %c0_18] : memref<1x128xf32, #tpu.memory_space<vmem>>, vector<1x128xf32>
      %25 = vector.broadcast %24 : vector<1x128xf32> to vector<8x128xf32>
      %26 = arith.addf %23, %25 : vector<8x128xf32>
      %c0_19 = arith.constant 0 : index
      %c0_20 = arith.constant 0 : index
      %27 = vector.load %arg7[%c0_19, %c0_20] : memref<8x128xf32, #tpu.memory_space<vmem>>, vector<8x128xf32>
      tpu.vector_store %arg7[%c0_19, %c0_20], %26 {strides = array<i32>} : memref<8x128xf32, #tpu.memory_space<vmem>>, vector<8x128xf32>,
    } else {
    }
    return
  }
  func.func @transform_0(%arg0: i32, %arg1: i32) -> (i32, i32) {
    %c0_i32 = arith.constant 0 : i32
    return %arg0, %arg1 : i32, i32
  }
  func.func @transform_1(%arg0: i32, %arg1: i32) -> (i32, i32) {
    %c0_i32 = arith.constant 0 : i32
    %c0_i32_0 = arith.constant 0 : i32
    return %arg1, %c0_i32 : i32, i32
  }
  func.func @transform_2(%arg0: i32, %arg1: i32) -> (i32, i32) {
    %c0_i32 = arith.constant 0 : i32
    %c0_i32_0 = arith.constant 0 : i32
    %c0_i32_1 = arith.constant 0 : i32
    return %c0_i32, %c0_i32_0 : i32, i32
  }
  func.func @transform_3(%arg0: i32, %arg1: i32) -> (i32, i32) {
    %c0_i32 = arith.constant 0 : i32
    %c0_i32_0 = arith.constant 0 : i32
    %c0_i32_1 = arith.constant 0 : i32
    return %c0_i32, %c0_i32_0 : i32, i32
  }
  func.func @transform_4(%arg0: i32, %arg1: i32) -> (i32, i32) {
    %c0_i32 = arith.constant 0 : i32
    %c0_i32_0 = arith.constant 0 : i32
    %c0_i32_1 = arith.constant 0 : i32
    return %c0_i32, %c0_i32_0 : i32, i32
  }
  func.func @transform_5(%arg0: i32, %arg1: i32) -> (i32, i32) {
    %c0_i32 = arith.constant 0 : i32
    %c0_i32_0 = arith.constant 0 : i32
    return %arg0, %c0_i32 : i32, i32
  }
}

</mosaic_0001>

<bundles_post_ra>
// kernel: tpu_custom_call.1
= control target key start
LH: loop header
LB: loop body
LE: loop exit
PB: predicated region body
PF: predicated region fallthrough
CT: control target
= control target key end

     0   :  { %s1380_s0 = inlined_call_operand.vmem [shape: bf16[8,1024], index: 0, kind: input, shape index: {}]   ;;  %s1381_s1 = inlined_call_operand.vmem [shape: bf16[1024,32], index: 1, kind: input, shape index: {}]   ;;  %s1382_s2 = inlined_call_operand.vmem [shape: f32[1,32], index: 2, kind: input, shape index: {}]   ;;  %s1383_s3 = inlined_call_operand.vmem [shape: bf16[32,128], index: 3, kind: input, shape index: {}]   ;;  %s1384_s4 = inlined_call_operand.vmem [shape: f32[1,128], index: 4, kind: input, shape index: {}]   ;;  %s1385_s5 = inlined_call_operand.hbm [shape: f32[8,128], index: 5, kind: output, shape index: {}]  }
   0x1   :  { %v1015_v0 = vld [vmem:[%s1381_s1 + $0x40] sm:$0xff]   ;;  %v1019_v4 = vld [vmem:[%s1381_s1 + $0x48] sm:$0xff]   ;;  %v1023_v8 = vld [vmem:[%s1381_s1 + $0x50] sm:$0xff]  }
   0x2   :  { %v1016_v1 = vld [vmem:[%s1381_s1 + $0xc0] sm:$0xff]   ;;  %913 = vmatprep.subr.bf16.mxu0 %v1015_v0  ;;  %v1020_v5 = vld [vmem:[%s1381_s1 + $0xc8] sm:$0xff]   ;;  %v1024_v9 = vld [vmem:[%s1381_s1 + $0xd0] sm:$0xff]  }
   0x3   :  { %v1017_v2 = vld [vmem:[%s1381_s1] sm:$0xff]   ;;  %935 = vmatprep.subr.bf16.mxu1 %v1016_v1  ;;  %v1021_v6 = vld [vmem:[%s1381_s1 + $0x8] sm:$0xff]   ;;  %v1025_v10 = vld [vmem:[%s1381_s1 + $0x10] sm:$0xff]  }
   0x4   :  { %v1018_v3 = vld [vmem:[%s1381_s1 + $0x80] sm:$0xff]   ;;  %914 = vmatpush3.bf16.msra.mxu0 %v1017_v2  ;;  %v1022_v7 = vld [vmem:[%s1381_s1 + $0x88] sm:$0xff]   ;;  %v1026_v11 = vld [vmem:[%s1381_s1 + $0x90] sm:$0xff]  }
   0x5   :  { %936 = vmatpush3.bf16.msra.mxu1 %v1018_v3  ;;  %915 = vmatprep.subr.bf16.mxu0 %v1019_v4  ;;  %v1027_v12 = vld [vmem:[%s1381_s1 + $0x58] sm:$0xff]   ;;  %v1031_v16 = vld [vmem:[%s1381_s1 + $0x60] sm:$0xff]   ;;  %v1035_v20 = vld [vmem:[%s1381_s1 + $0x68] sm:$0xff]  }
   0x6   :  { %937 = vmatprep.subr.bf16.mxu1 %v1020_v5  ;;  %v1028_v13 = vld [vmem:[%s1381_s1 + $0xd8] sm:$0xff]   ;;  %v1032_v17 = vld [vmem:[%s1381_s1 + $0xe0] sm:$0xff]   ;;  %v1036_v21 = vld [vmem:[%s1381_s1 + $0xe8] sm:$0xff]  }
   0x7   :  { %v1029_v14 = vld [vmem:[%s1381_s1 + $0x18] sm:$0xff]   ;;  %v1033_v18 = vld [vmem:[%s1381_s1 + $0x20] sm:$0xff]   ;;  %v1037_v22 = vld [vmem:[%s1381_s1 + $0x28] sm:$0xff]  }
   0x8   :  { %916 = vmatpush3.bf16.msra.mxu0 %v1021_v6  ;;  %v1030_v15 = vld [vmem:[%s1381_s1 + $0x98] sm:$0xff]   ;;  %v1034_v19 = vld [vmem:[%s1381_s1 + $0xa0] sm:$0xff]   ;;  %v1038_v23 = vld [vmem:[%s1381_s1 + $0xa8] sm:$0xff]  }
   0x9   :  { %938 = vmatpush3.bf16.msra.mxu1 %v1022_v7  ;;  %917 = vmatprep.subr.bf16.mxu0 %v1023_v8  ;;  %v1039_v24 = vld [vmem:[%s1381_s1 + $0x70] sm:$0xff]   ;;  %v1043_v28 = vld [vmem:[%s1381_s1 + $0x78] sm:$0xff]   ;;  %v36_v32 = vld [vmem:[%s1380_s0] sm:$0xff] }
   0xa   :  { %939 = vmatprep.subr.bf16.mxu1 %v1024_v9  ;;  %v1040_v25 = vld [vmem:[%s1381_s1 + $0xf0] sm:$0xff]   ;;  %v1044_v29 = vld [vmem:[%s1381_s1 + $0xf8] sm:$0xff]   ;;  %v37_v33 = vld [vmem:[%s1380_s0 + $0x8] sm:$0xff]  ;;  %v837_v34 = vcombine.low %v36_v32, %v36_v32  ;;  %v838_v35 = vcombine.high %v36_v32, %v36_v32 }
   0xb   :  { %v1041_v26 = vld [vmem:[%s1381_s1 + $0x30] sm:$0xff]   ;;  %v1045_v30 = vld [vmem:[%s1381_s1 + $0x38] sm:$0xff]   ;;  %v839_v36 = vcombine.low %v37_v33, %v37_v33  ;;  %v840_v37 = vcombine.high %v37_v33, %v37_v33  ;;  %v1051_v38 = vld [vmem:[%s1381_s1 + $0x140] sm:$0xff]  }
   0xc   :  { %918 = vmatpush3.bf16.msra.mxu0 %v1025_v10  ;;  %v1042_v27 = vld [vmem:[%s1381_s1 + $0xb0] sm:$0xff]   ;;  %v1046_v31 = vld [vmem:[%s1381_s1 + $0xb8] sm:$0xff]   ;;  %v1052_v39 = vld [vmem:[%s1381_s1 + $0x1c0] sm:$0xff]   ;;  %612 = vmatprep.mubr.bf16.mxu0 %v838_v35 }
   0xd   :  { %940 = vmatpush3.bf16.msra.mxu1 %v1026_v11  ;;  %919 = vmatprep.subr.bf16.mxu0 %v1027_v12  ;;  %v1053_v40 = vld [vmem:[%s1381_s1 + $0x100] sm:$0xff]   ;;  %v1055_v42 = vld [vmem:[%s1381_s1 + $0x148] sm:$0xff]   ;;  %v1059_v46 = vld [vmem:[%s1381_s1 + $0x150] sm:$0xff]  }
   0xe   :  { %941 = vmatprep.subr.bf16.mxu1 %v1028_v13  ;;  %652 = vmatprep.mubr.bf16.mxu1 %v840_v37  ;;  %v1054_v41 = vld [vmem:[%s1381_s1 + $0x180] sm:$0xff]   ;;  %v1056_v43 = vld [vmem:[%s1381_s1 + $0x1c8] sm:$0xff]   ;;  %v1060_v47 = vld [vmem:[%s1381_s1 + $0x1d0] sm:$0xff]  }
   0xf   :  { %v1057_v44 = vld [vmem:[%s1381_s1 + $0x108] sm:$0xff]   ;;  %v1061_v48 = vld [vmem:[%s1381_s1 + $0x110] sm:$0xff]   ;;  %v1063_v50 = vld [vmem:[%s1381_s1 + $0x158] sm:$0xff]  }
  0x10   :  { %920 = vmatpush3.bf16.msra.mxu0 %v1029_v14  ;;  %v1058_v45 = vld [vmem:[%s1381_s1 + $0x188] sm:$0xff]   ;;  %v1062_v49 = vld [vmem:[%s1381_s1 + $0x190] sm:$0xff]   ;;  %v1064_v51 = vld [vmem:[%s1381_s1 + $0x1d8] sm:$0xff]  }
  0x11   :  { %942 = vmatpush3.bf16.msra.mxu1 %v1030_v15  ;;  %921 = vmatprep.subr.bf16.mxu0 %v1031_v16  ;;  %v1065_v52 = vld [vmem:[%s1381_s1 + $0x118] sm:$0xff]   ;;  %v1067_v54 = vld [vmem:[%s1381_s1 + $0x160] sm:$0xff]   ;;  %v1071_v58 = vld [vmem:[%s1381_s1 + $0x168] sm:$0xff]  }
  0x12   :  { %943 = vmatprep.subr.bf16.mxu1 %v1032_v17  ;;  %v1066_v53 = vld [vmem:[%s1381_s1 + $0x198] sm:$0xff]   ;;  %v1068_v55 = vld [vmem:[%s1381_s1 + $0x1e0] sm:$0xff]   ;;  %v1072_v59 = vld [vmem:[%s1381_s1 + $0x1e8] sm:$0xff]  }
  0x13   :  { %v1069_v56 = vld [vmem:[%s1381_s1 + $0x120] sm:$0xff]   ;;  %v1073_v60 = vld [vmem:[%s1381_s1 + $0x128] sm:$0xff]   ;;  %v1075_v62 = vld [vmem:[%s1381_s1 + $0x170] sm:$0xff]  }
  0x14   :  { %922 = vmatpush3.bf16.msra.mxu0 %v1033_v18  ;;  %v1070_v57 = vld [vmem:[%s1381_s1 + $0x1a0] sm:$0xff]   ;;  %v1074_v61 = vld [vmem:[%s1381_s1 + $0x1a8] sm:$0xff]   ;;  %v1076_v63 = vld [vmem:[%s1381_s1 + $0x1f0] sm:$0xff]  }
  0x15   :  { %944 = vmatpush3.bf16.msra.mxu1 %v1034_v19  ;;  %923 = vmatprep.subr.bf16.mxu0 %v1035_v20  ;;  %v1077_v0 = vld [vmem:[%s1381_s1 + $0x130] sm:$0xff]   ;;  %v1079_v2 = vld [vmem:[%s1381_s1 + $0x178] sm:$0xff]  }
  0x16   :  { %945 = vmatprep.subr.bf16.mxu1 %v1036_v21  ;;  %v1078_v1 = vld [vmem:[%s1381_s1 + $0x1b0] sm:$0xff]   ;;  %v1080_v3 = vld [vmem:[%s1381_s1 + $0x1f8] sm:$0xff]  }
  0x17   :  { %v1081_v4 = vld [vmem:[%s1381_s1 + $0x138] sm:$0xff]   ;;  %v38_v6 = vld [vmem:[%s1380_s0 + $0x10] sm:$0xff] }
  0x18   :  { %924 = vmatpush3.bf16.msra.mxu0 %v1037_v22  ;;  %v1082_v5 = vld [vmem:[%s1381_s1 + $0x1b8] sm:$0xff]   ;;  %v841_v7 = vcombine.low %v38_v6, %v38_v6  ;;  %v842_v8 = vcombine.high %v38_v6, %v38_v6 }
  0x19   :  { %946 = vmatpush3.bf16.msra.mxu1 %v1038_v23  ;;  %925 = vmatprep.subr.bf16.mxu0 %v1039_v24  ;;  %v39_v9 = vld [vmem:[%s1380_s0 + $0x18] sm:$0xff] }
  0x1a   :  { %947 = vmatprep.subr.bf16.mxu1 %v1040_v25  ;;  %v843_v10 = vcombine.low %v39_v9, %v39_v9  ;;  %v844_v11 = vcombine.high %v39_v9, %v39_v9 }
  0x1c   :  { %926 = vmatpush3.bf16.msra.mxu0 %v1041_v26 }
  0x1d   :  { %948 = vmatpush3.bf16.msra.mxu1 %v1042_v27  ;;  %927 = vmatprep.subr.bf16.mxu0 %v1043_v28 }
  0x1e   :  { %949 = vmatprep.subr.bf16.mxu1 %v1044_v29 }
  0x20   :  { %928 = vmatpush3.bf16.msra.mxu0 %v1045_v30 }
  0x21   :  { %950 = vmatpush3.bf16.msra.mxu1 %v1046_v31  ;;  %957 = vmatprep.subr.bf16.mxu0 %v1051_v38 }
  0x22   :  { %979 = vmatprep.subr.bf16.mxu1 %v1052_v39 }
  0x23   :  { %613 = vmatmul.mubr.bf16.vlgmr.msra.gmra.mrb[0].mxu0 %v837_v34 }
  0x24   :  { %653 = vmatmul.mubr.bf16.vlgmr.msra.gmra.mrb[0].mxu1 %v839_v36  ;;  %958 = vmatpush3.bf16.msra.mxu0 %v1053_v40 }
  0x25   :  { %980 = vmatpush3.bf16.msra.mxu1 %v1054_v41  ;;  %959 = vmatprep.subr.bf16.mxu0 %v1055_v42 }
  0x26   :  { %981 = vmatprep.subr.bf16.mxu1 %v1056_v43 }
  0x28   :  { %960 = vmatpush3.bf16.msra.mxu0 %v1057_v44 }
  0x29   :  { %982 = vmatpush3.bf16.msra.mxu1 %v1058_v45  ;;  %961 = vmatprep.subr.bf16.mxu0 %v1059_v46 }
  0x2a   :  { %983 = vmatprep.subr.bf16.mxu1 %v1060_v47 }
  0x2c   :  { %962 = vmatpush3.bf16.msra.mxu0 %v1061_v48 }
  0x2d   :  { %984 = vmatpush3.bf16.msra.mxu1 %v1062_v49  ;;  %963 = vmatprep.subr.bf16.mxu0 %v1063_v50 }
  0x2e   :  { %985 = vmatprep.subr.bf16.mxu1 %v1064_v51 }
  0x30   :  { %964 = vmatpush3.bf16.msra.mxu0 %v1065_v52 }
  0x31   :  { %986 = vmatpush3.bf16.msra.mxu1 %v1066_v53  ;;  %965 = vmatprep.subr.bf16.mxu0 %v1067_v54 }
  0x32   :  { %987 = vmatprep.subr.bf16.mxu1 %v1068_v55 }
  0x34   :  { %966 = vmatpush3.bf16.msra.mxu0 %v1069_v56 }
  0x35   :  { %988 = vmatpush3.bf16.msra.mxu1 %v1070_v57  ;;  %967 = vmatprep.subr.bf16.mxu0 %v1071_v58 }
  0x36   :  { %989 = vmatprep.subr.bf16.mxu1 %v1072_v59 }
  0x38   :  { %968 = vmatpush3.bf16.msra.mxu0 %v1073_v60 }
  0x39   :  { %990 = vmatpush3.bf16.msra.mxu1 %v1074_v61  ;;  %969 = vmatprep.subr.bf16.mxu0 %v1075_v62 }
  0x3a   :  { %991 = vmatprep.subr.bf16.mxu1 %v1076_v63 }
  0x3c   :  { %970 = vmatpush3.bf16.msra.mxu0 %v1077_v0 }
  0x3d   :  { %992 = vmatpush3.bf16.msra.mxu1 %v1078_v1  ;;  %971 = vmatprep.subr.bf16.mxu0 %v1079_v2 }
  0x3e   :  { %993 = vmatprep.subr.bf16.mxu1 %v1080_v3 }
  0x40   :  { %972 = vmatpush3.bf16.msra.mxu0 %v1081_v4 }
  0x41   :  { %994 = vmatpush3.bf16.msra.mxu1 %v1082_v5 }
  0x42   :  { %10 = vsyncpa [#allocation4], 0  ;;  %692 = vmatprep.mubr.bf16.mxu0 %v842_v8  ;;  %732 = vmatprep.mubr.bf16.mxu1 %v844_v11  ;;  %v836_v12 = vld [vmem:[%s1382_s2] ss:$0 sm:$0xff]  ;;  %vm33_vm0 = vcmask 261120   ;;  %v1115_v42 = vmov 0.0  }
  0x43   :  { %693 = vmatmul.mubr.bf16.vlgmr.msra.gmra.mrb[4].mxu0 %v841_v7  ;;  %34 = vst.msk [vmem:[#allocation2] sm:$0xff] %vm33_vm0, %v836_v12  ;;  %v1087_v41 = vld [vmem:[%s1383_s3] sm:$0xff]   ;;  %1004 = vmatprep.subr.bf16.mxu0 %v1115_v42  ;;  %v1088_v43 = vld [vmem:[%s1383_s3 + $0x8] sm:$0xff]   ;;  %vm1116_vm1 = vmmov 0   ;;  %s1117_s9 = smov [#allocation3]  }
  0x44   :  { %733 = vmatmul.mubr.bf16.vlgmr.msra.gmra.mrb[4].mxu1 %v843_v10  ;;  %1005 = vmatpush3.bf16.msra.mxu0 %v1087_v41  ;;  %v909_v49 = vld [vmem:[%s1384_s4] ss:$0 sm:$0xff]  ;;  %s828_s10 = sshll.u32 %s1117_s9, 4  ;;  %s829_s10 = int_to_ptr.vmem [resolvable:$true] %s828_s10 }
  0x45   :  { %1006 = vmatprep.subr.bf16.mxu0 %v1115_v42  ;;  %1008 = vmatprep.mubr.msk.bf16.mxu0 %vm1116_vm1, %v1115_v42  ;;  %s1091_s3 = scalar_lea.vmem %s829_s10, 128  ;;  %p1096_p1 = scmp.lt.s32.totalorder %s829_s10, %s829_s10 }
  0x46   :  { %p1092_p0 = scmp.ne.s32.totalorder %s829_s10, %s1091_s3  ;;  %p1097_p2 = scmp.lt.s32.totalorder %s1091_s3, %s1091_s3 }
  0x48   :  { %1007 = vmatpush3.bf16.msra.mxu0 %v1088_v43  ;;  %p1098_p3 = por %p1097_p2, %p1096_p1 }
  0x4a   :  { %v35_v35 = vld [vmem:[#allocation2] sm:$0xff]  ;;  %p1099_p4 = pnand %p1098_p3, %p1092_p0 }
  0xf6   :  { %v929_v13 = vpop.f32.mrb[0].mxu0 }
  0xf7   :  { %v951_v14 = vpop.f32.mrb[0].mxu1  ;;  %v930_v15 = vpop.f32.mrb[1].mxu0 }
  0xf8   :  { %v952_v16 = vpop.f32.mrb[1].mxu1  ;;  %v931_v17 = vadd.f32 %v930_v15, %v929_v13  ;;  %v932_v19 = vpop.f32.mrb[2].mxu0 }
  0xf9   :  { %v953_v18 = vadd.f32 %v952_v16, %v951_v14  ;;  %v954_v20 = vpop.f32.mrb[2].mxu1  ;;  %v933_v21 = vpop.f32.mrb[3].mxu0 }
  0xfa   :  { %v955_v22 = vpop.f32.mrb[3].mxu1 }
  0xfb   :  { %v655_v23 = vadd.f32 %v953_v18, %v931_v17 }
 0x116   :  { %v973_v24 = vpop.f32.mrb[4].mxu0 }
 0x117   :  { %v995_v25 = vpop.f32.mrb[4].mxu1  ;;  %v974_v26 = vpop.f32.mrb[5].mxu0 }
 0x118   :  { %v996_v27 = vpop.f32.mrb[5].mxu1  ;;  %v975_v28 = vadd.f32 %v974_v26, %v973_v24  ;;  %v976_v30 = vpop.f32.mrb[6].mxu0 }
 0x119   :  { %v997_v29 = vadd.f32 %v996_v27, %v995_v25  ;;  %v998_v31 = vpop.f32.mrb[6].mxu1  ;;  %v977_v32 = vpop.f32.mrb[7].mxu0 }
 0x11a   :  { %v999_v33 = vpop.f32.mrb[7].mxu1  ;;  %v695_v34 = vadd.f32 %v975_v28, %v655_v23 }
 0x11c   :  { %v735_v36 = vadd.f32 %v997_v29, %v695_v34 }
 0x11e   :  { %v740_v37 = vadd.f32 %v735_v36, %v35_v35 }
 0x120   :  { %742 = vst.msk [vmem:[#allocation2] sm:$0xff] %vm33_vm0, %v740_v37 }
 0x127   :  { %v746_v38 = vld [vmem:[#allocation2] sm:$0xff] }
 0x128   :  { %v747_v39 = vmul.f32 %v746_v38, %v746_v38 }
 0x12a   :  { %v748_v40 = vsel %vm33_vm0, %v747_v39, 0.0 }
 0x12b   :  { %749 = vadd.xlane.f32.xlu0 %v748_v40 }
 0x1b8   :  { %v750_v44 = vpop.xlane.xlu0 %749 }
 0x1b9   :  { %v751_v45 = vmax.f32 %v750_v44, 1e-24 }
 0x1bb   :  { %1089 = vrsqrt.f32 %v751_v45 }
 0x1c5   :  { %v1090_v46 = vpop.eup %1089 }
 0x1c6   :  { %v753_v47 = vmul.f32 %v1090_v46, %v746_v38 }
 0x1c8   :  { %v754_v48 = vpack.c.bf16 %v753_v47, %v753_v47 }
 0x1ca   :  { %1009 = vmatmul.mubr.msk.bf16.vlgmr.msra.gmra.mrb[8].mxu0 %vm33_vm0, %v754_v48 }
 0x29d   :  { %v815_v50 = vpop.f32.mrb[8].mxu0 }
 0x29e   :  { %v816_v51 = vadd.f32 %v909_v49, %v815_v50  ;;  %v1010_v52 = vpop.f32.mrb[9].mxu0 }
 0x29f   :  { %v818_v53 = vpop.f32.mrb[10].mxu0 }
 0x2a0   :  { %821 = vst [vmem:[#allocation3] sm:$0xff] %v816_v51  ;;  %v1011_v54 = vpop.f32.mrb[11].mxu0 }
 0x2a1   :  { %1102 = shalt.err (!%p1099_p4)
}
 0x2a2   :  { %s1103_s4 = scalar_lea.hbm %s1385_s5, 128 }
 0x2a3   :  { %p1104_p5 = scmp.ne.s32.totalorder %s1385_s5, %s1103_s4  ;;  %p1107_p6 = scmp.lt.u32.totalorder %s1103_s4, %s1385_s5 }
 0x2a5   :  { %p1109_p7 = pnand %p1107_p6, %p1104_p5 }
 0x2a7   :  { %1112 = shalt.err (!%p1109_p7)
}
 0x2a8   :  { %831 = dma.vmem_to_hbm [thread:$0]  %s829_s10, 128, %s1385_s5, [#allocation4]  }
 0x2a9   :  { %1113 = dma.done.wait [#allocation4], 128  }
 0x2aa   :  { %1114 = vsyncadd [#allocation4], 4294967168 }
 0x2ab   :  { %835 = vsyncpa [#allocation4], 1 }

</bundles_post_ra>
